<compile_context>
chip_gen: v7x
topology: tpu7x:2x2x1
jax: 0.10.0
libtpu: 0.0.40
codegen_flags: <defaults>
</compile_context>

<pallas_src>
import jax
import jax.numpy as jnp
from jax.experimental import pallas as pl
from jax.experimental.pallas import tpu as pltpu

_QMAX = 127.0                               # 2^(8-1) - 1
_EPS = 1e-12
_LANES = 128
_ROW_ALIGN = 32                             # covers f32(8)/bf16(16)/int8(32) sublane tiling
_TARGET_BLOCK_BYTES = 2 * 1024 * 1024       # per array, per pipeline buffer (dtype-aware rows)
_VMEM_LIMIT_BYTES = 32 * 1024 * 1024        # <= physical VMEM on v5e/v6e/v7x, > v5e's 16 MiB default
_FUSED_MAX_TOTAL_BYTES = 8 * 1024 * 1024    # x+y+z+out resident in VMEM in one pass


def _round_up(a, m):
    return ((a + m - 1) // m) * m


def _fake_quant(v_f32, amax):
    """Symmetric 8-bit fake-quant of an f32 tile with a scalar amax."""
    amax_c = jnp.maximum(amax.astype(jnp.float32), jnp.float32(_EPS))   # scalar
    scale = jnp.float32(_QMAX) / amax_c                                  # scalar
    deq = jnp.float32(1.0) / scale                                       # scalar (== divide-by-scale)
    q = jnp.clip(jnp.round(v_f32 * scale), -_QMAX, _QMAX)
    return q * deq                                                       # multiply, not per-element divide


def _fused_fq_add_kernel(x_ref, y_ref, z_ref, o_ref):
    """Single-pass path: whole tensors resident in VMEM. Each input is read
    from HBM exactly once; per-tensor dynamic amax is reduced on-chip."""
    def fq(ref):
        v = ref[...].astype(jnp.float32)
        return _fake_quant(v, jnp.max(jnp.abs(v)))

    o_ref[...] = (fq(x_ref) + fq(y_ref) + fq(z_ref)).astype(o_ref.dtype)


def _tiled_fq_add_kernel(amax_ref, x_ref, y_ref, z_ref, o_ref):
    """Streaming path: fake-quant each (block_rows, 128) tile with its
    per-tensor amax (read from SMEM) and sum the three results."""
    out = (_fake_quant(x_ref[...].astype(jnp.float32), amax_ref[0])
           + _fake_quant(y_ref[...].astype(jnp.float32), amax_ref[1])
           + _fake_quant(z_ref[...].astype(jnp.float32), amax_ref[2]))
    o_ref[...] = out.astype(o_ref.dtype)


def _to_slab(t, rows):
    """Flatten to a lane-dense (rows, 128) slab. The reshape is free for
    contiguous data; zero-padding only happens when n % 128 != 0."""
    flat = jnp.ravel(t)
    padded = rows * _LANES
    if padded != flat.size:
        flat = jnp.pad(flat, (0, padded - flat.size))
    return flat.reshape(rows, _LANES)


def _quant_multi_add_impl(x, y, z):
    assert x.shape == y.shape == z.shape
    orig_shape = x.shape
    out_dtype = jnp.result_type(x.dtype, y.dtype, z.dtype)
    n = x.size
    rows = int(pl.cdiv(n, _LANES))
    aligned = (rows * _LANES == n)

    itemsizes = (x.dtype.itemsize, y.dtype.itemsize, z.dtype.itemsize,
                 jnp.dtype(out_dtype).itemsize)
    total_bytes = n * sum(itemsizes)

    # ---------------- Fused fits-in-VMEM fast path ----------------
    if total_bytes <= _FUSED_MAX_TOTAL_BYTES:
        xs, ys, zs = (_to_slab(t, rows) for t in (x, y, z))
        out2d = pl.pallas_call(
            _fused_fq_add_kernel,
            out_shape=jax.ShapeDtypeStruct((rows, _LANES), out_dtype),
            compiler_params=pltpu.CompilerParams(
                vmem_limit_bytes=_VMEM_LIMIT_BYTES),
        )(xs, ys, zs)
        flat = out2d.reshape(-1)
        if not aligned:
            flat = flat[:n]
        return flat.reshape(orig_shape)

    # ---------------- Streaming (tiled, pipelined) path ----------------
    # Pass 1: per-tensor dynamic amax via XLA reductions (abs+max fuse per
    # tensor and run near HBM roofline; fusing the three reductions into one
    # Pallas pass would only save launch overhead, same bytes).
    amax = jnp.stack([
        jnp.max(jnp.abs(x)).astype(jnp.float32),
        jnp.max(jnp.abs(y)).astype(jnp.float32),
        jnp.max(jnp.abs(z)).astype(jnp.float32),
    ])

    if not aligned:
        # TODO(synk): for the rare misaligned-large case, mask the ragged tail
        # in-kernel (count in SMEM + masked store) instead of these pad copies.
        pass
    xs, ys, zs = (_to_slab(t, rows) for t in (x, y, z))

    # Dtype-aware block sizing: target a byte budget per array per buffer, but
    # never let the grid collapse to a single step (keep >= ~8 pipeline steps
    # so DMA/compute overlap and v7x two-TC sharding are preserved).
    max_item = max(itemsizes)
    budget_rows = max(_ROW_ALIGN, _TARGET_BLOCK_BYTES // (_LANES * max_item))
    eighth_rows = _round_up(int(pl.cdiv(rows, 8)), _ROW_ALIGN)
    block_rows = max(512, min(budget_rows, eighth_rows))
    grid = (int(pl.cdiv(rows, block_rows)),)

    out2d = pl.pallas_call(
        _tiled_fq_add_kernel,
        out_shape=jax.ShapeDtypeStruct((rows, _LANES), out_dtype),
        grid=grid,
        in_specs=[
            pl.BlockSpec(memory_space=pltpu.MemorySpace.SMEM),       # amax scalars
            pl.BlockSpec((block_rows, _LANES), lambda i: (i, 0)),    # x tiles
            pl.BlockSpec((block_rows, _LANES), lambda i: (i, 0)),    # y tiles
            pl.BlockSpec((block_rows, _LANES), lambda i: (i, 0)),    # z tiles
        ],
        out_specs=pl.BlockSpec((block_rows, _LANES), lambda i: (i, 0)),
        compiler_params=pltpu.CompilerParams(
            dimension_semantics=("parallel",),
            vmem_limit_bytes=_VMEM_LIMIT_BYTES),
        cost_estimate=pl.CostEstimate(
            flops=17 * n, transcendentals=0, bytes_accessed=int(total_bytes)),
    )(amax, xs, ys, zs)

    flat = out2d.reshape(-1)
    if not aligned:
        flat = flat[:n]
    return flat.reshape(orig_shape)


quant_multi_add = jax.jit(_quant_multi_add_impl)


def _reference(x, y, z):
    def fq(t):
        t = t.astype(jnp.float32)
        amax = jnp.max(jnp.abs(t))
        scale = _QMAX / jnp.maximum(amax, _EPS)
        return jnp.clip(jnp.round(t * scale), -_QMAX, _QMAX) / scale

    return fq(x) + fq(y) + fq(z)


if __name__ == "__main__":
    key = jax.random.PRNGKey(0)
    kx, ky, kz = jax.random.split(key, 3)

    # Small NCHW inputs consistent with the module's forward (fused fast path).
    shape = (2, 4, 16, 16)
    x = jax.random.normal(kx, shape, dtype=jnp.float32)
    y = jax.random.normal(ky, shape, dtype=jnp.float32) * 2.0
    z = jax.random.normal(kz, shape, dtype=jnp.float32) * 0.5
    out = jax.block_until_ready(quant_multi_add(x, y, z))
    ref = _reference(x, y, z)
    assert out.shape == shape and out.dtype == x.dtype
    assert jnp.allclose(out, ref, atol=1e-5, rtol=1e-5), float(
        jnp.max(jnp.abs(out - ref)))

    # Ragged size (n % 128 != 0): fused path with a zero-padded tail (no extra
    # HBM passes at this size).
    shape2 = (3, 5, 7, 11)
    x2 = jax.random.normal(kx, shape2, dtype=jnp.float32)
    y2 = jax.random.normal(ky, shape2, dtype=jnp.float32) * 1.3
    z2 = jax.random.normal(kz, shape2, dtype=jnp.float32) * 0.7
    out2 = jax.block_until_ready(quant_multi_add(x2, y2, z2))
    ref2 = _reference(x2, y2, z2)
    assert jnp.allclose(out2, ref2, atol=1e-5, rtol=1e-5), float(
        jnp.max(jnp.abs(out2 - ref2)))

    # Larger aligned tensor: exercises the tiled, pipelined streaming path
    # (no pad, no output slice, grid of ~8 "parallel" steps).
    shape3 = (8, 32, 64, 64)   # 1,048,576 elements = 4 MiB f32 per tensor
    x3 = jax.random.normal(kx, shape3, dtype=jnp.float32)
    y3 = jax.random.normal(ky, shape3, dtype=jnp.float32) * 1.7
    z3 = jax.random.normal(kz, shape3, dtype=jnp.float32) * 0.3
    out3 = jax.block_until_ready(quant_multi_add(x3, y3, z3))
    ref3 = _reference(x3, y3, z3)
    assert out3.shape == shape3 and out3.dtype == x3.dtype
    assert jnp.allclose(out3, ref3, atol=1e-5, rtol=1e-5), float(
        jnp.max(jnp.abs(out3 - ref3)))

    print("KERNEL_OK")
</pallas_src>

<mosaic_0001>
module attributes {stable_mosaic.version = 11 : i64} {
  func.func @_fused_fq_add_kernel(%arg0: memref<16x128xf32, #tpu.memory_space<vmem>>, %arg1: memref<16x128xf32, #tpu.memory_space<vmem>>, %arg2: memref<16x128xf32, #tpu.memory_space<vmem>>, %arg3: memref<16x128xf32, #tpu.memory_space<vmem>>) attributes {dimension_semantics = [], scalar_prefetch = 0 : i64, scratch_operands = 0 : i64, tpu.core_type = #tpu.core_type<tc>} {
    %c0 = arith.constant 0 : index
    %c0_0 = arith.constant 0 : index
    %0 = vector.load %arg0[%c0, %c0_0] : memref<16x128xf32, #tpu.memory_space<vmem>>, vector<16x128xf32>
    %1 = math.absf %0 : vector<16x128xf32>
    %2 = vector.shape_cast %1 : vector<16x128xf32> to vector<1x16x128xf32>
    %cst = arith.constant dense<0xFF800000> : vector<1xf32>
    %3 = vector.multi_reduction <maximumf>, %2, %cst [1, 2] : vector<1x16x128xf32> to vector<1xf32>
    %4 = vector.shape_cast %3 : vector<1xf32> to vector<1x1x1xf32>
    %5 = vector.extract %4[0, 0, 0] : f32 from vector<1x1x1xf32>
    %cst_1 = arith.constant 9.99999996E-13 : f32
    %6 = arith.maximumf %5, %cst_1 : f32
    %cst_2 = arith.constant 1.270000e+02 : f32
    %7 = arith.divf %cst_2, %6 : f32
    %cst_3 = arith.constant 1.000000e+00 : f32
    %8 = arith.divf %cst_3, %7 : f32
    %9 = vector.broadcast %7 : f32 to vector<16x128xf32>
    %10 = arith.mulf %0, %9 : vector<16x128xf32>
    %11 = math.roundeven %10 : vector<16x128xf32>
    %cst_4 = arith.constant -1.270000e+02 : f32
    %cst_5 = arith.constant 1.270000e+02 : f32
    %12 = vector.broadcast %cst_4 : f32 to vector<16x128xf32>
    %13 = arith.maximumf %12, %11 : vector<16x128xf32>
    %14 = vector.broadcast %cst_5 : f32 to vector<16x128xf32>
    %15 = arith.minimumf %14, %13 : vector<16x128xf32>
    %16 = vector.broadcast %8 : f32 to vector<16x128xf32>
    %17 = arith.mulf %15, %16 : vector<16x128xf32>
    %c0_6 = arith.constant 0 : index
    %c0_7 = arith.constant 0 : index
    %18 = vector.load %arg1[%c0_6, %c0_7] : memref<16x128xf32, #tpu.memory_space<vmem>>, vector<16x128xf32>
    %19 = math.absf %18 : vector<16x128xf32>
    %20 = vector.shape_cast %19 : vector<16x128xf32> to vector<1x16x128xf32>
    %cst_8 = arith.constant dense<0xFF800000> : vector<1xf32>
    %21 = vector.multi_reduction <maximumf>, %20, %cst_8 [1, 2] : vector<1x16x128xf32> to vector<1xf32>
    %22 = vector.shape_cast %21 : vector<1xf32> to vector<1x1x1xf32>
    %23 = vector.extract %22[0, 0, 0] : f32 from vector<1x1x1xf32>
    %cst_9 = arith.constant 9.99999996E-13 : f32
    %24 = arith.maximumf %23, %cst_9 : f32
    %cst_10 = arith.constant 1.270000e+02 : f32
    %25 = arith.divf %cst_10, %24 : f32
    %cst_11 = arith.constant 1.000000e+00 : f32
    %26 = arith.divf %cst_11, %25 : f32
    %27 = vector.broadcast %25 : f32 to vector<16x128xf32>
    %28 = arith.mulf %18, %27 : vector<16x128xf32>
    %29 = math.roundeven %28 : vector<16x128xf32>
    %cst_12 = arith.constant -1.270000e+02 : f32
    %cst_13 = arith.constant 1.270000e+02 : f32
    %30 = vector.broadcast %cst_12 : f32 to vector<16x128xf32>
    %31 = arith.maximumf %30, %29 : vector<16x128xf32>
    %32 = vector.broadcast %cst_13 : f32 to vector<16x128xf32>
    %33 = arith.minimumf %32, %31 : vector<16x128xf32>
    %34 = vector.broadcast %26 : f32 to vector<16x128xf32>
    %35 = arith.mulf %33, %34 : vector<16x128xf32>
    %36 = arith.addf %17, %35 : vector<16x128xf32>
    %c0_14 = arith.constant 0 : index
    %c0_15 = arith.constant 0 : index
    %37 = vector.load %arg2[%c0_14, %c0_15] : memref<16x128xf32, #tpu.memory_space<vmem>>, vector<16x128xf32>
    %38 = math.absf %37 : vector<16x128xf32>
    %39 = vector.shape_cast %38 : vector<16x128xf32> to vector<1x16x128xf32>
    %cst_16 = arith.constant dense<0xFF800000> : vector<1xf32>
    %40 = vector.multi_reduction <maximumf>, %39, %cst_16 [1, 2] : vector<1x16x128xf32> to vector<1xf32>
    %41 = vector.shape_cast %40 : vector<1xf32> to vector<1x1x1xf32>
    %42 = vector.extract %41[0, 0, 0] : f32 from vector<1x1x1xf32>
    %cst_17 = arith.constant 9.99999996E-13 : f32
    %43 = arith.maximumf %42, %cst_17 : f32
    %cst_18 = arith.constant 1.270000e+02 : f32
    %44 = arith.divf %cst_18, %43 : f32
    %cst_19 = arith.constant 1.000000e+00 : f32
    %45 = arith.divf %cst_19, %44 : f32
    %46 = vector.broadcast %44 : f32 to vector<16x128xf32>
    %47 = arith.mulf %37, %46 : vector<16x128xf32>
    %48 = math.roundeven %47 : vector<16x128xf32>
    %cst_20 = arith.constant -1.270000e+02 : f32
    %cst_21 = arith.constant 1.270000e+02 : f32
    %49 = vector.broadcast %cst_20 : f32 to vector<16x128xf32>
    %50 = arith.maximumf %49, %48 : vector<16x128xf32>
    %51 = vector.broadcast %cst_21 : f32 to vector<16x128xf32>
    %52 = arith.minimumf %51, %50 : vector<16x128xf32>
    %53 = vector.broadcast %45 : f32 to vector<16x128xf32>
    %54 = arith.mulf %52, %53 : vector<16x128xf32>
    %55 = arith.addf %36, %54 : vector<16x128xf32>
    %c0_22 = arith.constant 0 : index
    %c0_23 = arith.constant 0 : index
    %56 = vector.load %arg3[%c0_22, %c0_23] : memref<16x128xf32, #tpu.memory_space<vmem>>, vector<16x128xf32>
    tpu.vector_store %arg3[%c0_22, %c0_23], %55 {strides = array<i32>} : memref<16x128xf32, #tpu.memory_space<vmem>>, vector<16x128xf32>,
    return
  }
}

</mosaic_0001>

<bundles_post_ra>
// kernel: _quant_multi_add_impl.1
= control target key start
LH: loop header
LB: loop body
LE: loop exit
PB: predicated region body
PF: predicated region fallthrough
CT: control target
= control target key end

     0   :  { %s169_s23 = smov 1e-12   ;;  %s233_s0 = inlined_call_operand.vmem [shape: f32[16,128], index: 0, kind: input, shape index: {}]   ;;  %s234_s1 = inlined_call_operand.vmem [shape: f32[16,128], index: 1, kind: input, shape index: {}]   ;;  %s235_s2 = inlined_call_operand.vmem [shape: f32[16,128], index: 2, kind: input, shape index: {}]   ;;  %s236_s3 = inlined_call_operand.vmem [shape: f32[16,128], index: 3, kind: output, shape index: {}]  }
   0x1   :  { %v14_v0 = vld [vmem:[%s233_s0] sm:$0xff]  ;;  %v15_v1 = vld [vmem:[%s233_s0 + $0x8] sm:$0xff] }
   0x2   :  { %v199_v2 = vld [vmem:[%s234_s1] sm:$0xff]  ;;  %v16_v3 = vand.u32 2147483647, %v14_v0  ;;  %v17_v4 = vand.u32 2147483647, %v15_v1  ;;  %v204_v5 = vld [vmem:[%s234_s1 + $0x8] sm:$0xff] }
   0x3   :  { %v50_v6 = vand.u32 2147483647, %v199_v2  ;;  %v51_v7 = vand.u32 2147483647, %v204_v5  ;;  %v211_v10 = vld [vmem:[%s235_s2] sm:$0xff]  ;;  %v216_v11 = vld [vmem:[%s235_s2 + $0x8] sm:$0xff] }
   0x4   :  { %v18_v8 = vmax.f32.f32 %v16_v3, %v17_v4  ;;  %v86_v12 = vand.u32 2147483647, %v211_v10  ;;  %v87_v13 = vand.u32 2147483647, %v216_v11 }
   0x5   :  { %v52_v9 = vmax.f32.f32 %v50_v6, %v51_v7 }
   0x6   :  { %19 = vmax.xlane.f32.xlu0 %v18_v8  ;;  %v88_v14 = vmax.f32.f32 %v86_v12, %v87_v13 }
   0x8   :  { %89 = vmax.xlane.f32.xlu1 %v88_v14 }
   0xa   :  { %53 = vmax.xlane.f32.xlu0 %v52_v9 }
  0x93   :  { %v20_v15 = vpop.xlane.xlu0 %19 }
  0x94   :  { %v21_v16 = vrot.slane %v20_v15, 4 }
  0x95   :  { %v90_v44 = vpop.xlane.xlu1 %89 }
  0x96   :  { %v22_v17 = vmax.f32 %v20_v15, %v21_v16  ;;  %v91_v45 = vrot.slane %v90_v44, 4 }
  0x97   :  { %v54_v24 = vpop.xlane.xlu0 %53 }
  0x98   :  { %v23_v18 = vrot.slane %v22_v17, 2  ;;  %v55_v25 = vrot.slane %v54_v24, 4  ;;  %v92_v46 = vmax.f32 %v90_v44, %v91_v45 }
  0x9a   :  { %v24_v19 = vmax.f32 %v22_v17, %v23_v18  ;;  %v56_v26 = vmax.f32 %v54_v24, %v55_v25  ;;  %v93_v47 = vrot.slane %v92_v46, 2 }
  0x9c   :  { %v25_v20 = vrot.slane %v24_v19, 1  ;;  %v57_v27 = vrot.slane %v56_v26, 2  ;;  %v94_v49 = vmax.f32 %v92_v46, %v93_v47 }
  0x9e   :  { %v26_v21 = vmax.f32 %v24_v19, %v25_v20  ;;  %v58_v29 = vmax.f32 %v56_v26, %v57_v27  ;;  %v95_v50 = vrot.slane %v94_v49, 1 }
  0xa0   :  { %132 = vpush %v26_v21  ;;  %v59_v30 = vrot.slane %v58_v29, 1  ;;  %v96_v52 = vmax.f32 %v94_v49, %v95_v50 }
  0xa2   :  { %v60_v32 = vmax.f32 %v58_v29, %v59_v30 }
  0xd1   :  { %s133_s1 = spop %132 }
  0xd2   :  { %s28_s24 = smax.f32 %s169_s23, %s133_s1 }
  0xd3   :  { %v29_v22 = vstv %s28_s24 }
  0xd4   :  { %157 = vrcp.f32 %v29_v22 }
  0xde   :  { %v158_v23 = vpop.eup %157 }
  0xdf   :  { %134 = vpush %v158_v23 }
 0x110   :  { %s135_s2 = spop %134 }
 0x111   :  { %s32_s25 = smul.f32 127.0, %s135_s2 }
 0x113   :  { %v33_v28 = vstv %s32_s25 }
 0x114   :  { %159 = vrcp.f32 %v33_v28  ;;  %v37_v33 = vmul.f32 %v33_v28, %v14_v0  ;;  %v38_v34 = vmul.f32 %v33_v28, %v15_v1 }
 0x116   :  { %v138_v35 = vround.rtne.f32 %v37_v33  ;;  %v139_v36 = vround.rtne.f32 %v38_v34 }
 0x118   :  { %v126_v37 = vclamps-f32 %v138_v35, 127.0  ;;  %v127_v38 = vclamps-f32 %v139_v36, 127.0 }
 0x11e   :  { %v160_v31 = vpop.eup %159 }
 0x11f   :  { %136 = vpush %v160_v31 }
 0x120   :  { %140 = vpush %v60_v32 }
 0x150   :  { %s137_s26 = spop %136 }
 0x151   :  { %v45_v39 = vstv %s137_s26  ;;  %s141_s27 = spop %140 }
 0x152   :  { %v46_v40 = vmul.f32 %v126_v37, %v45_v39  ;;  %v47_v41 = vmul.f32 %v127_v38, %v45_v39  ;;  %s62_s28 = smax.f32 %s169_s23, %s141_s27 }
 0x153   :  { %v63_v42 = vstv %s62_s28 }
 0x154   :  { %161 = vrcp.f32 %v63_v42 }
 0x15e   :  { %v162_v43 = vpop.eup %161 }
 0x15f   :  { %142 = vpush %v162_v43 }
 0x190   :  { %s143_s29 = spop %142 }
 0x191   :  { %s66_s30 = smul.f32 127.0, %s143_s29 }
 0x193   :  { %v67_v48 = vstv %s66_s30 }
 0x194   :  { %163 = vrcp.f32 %v67_v48  ;;  %v71_v53 = vmul.f32 %v67_v48, %v199_v2  ;;  %v72_v54 = vmul.f32 %v67_v48, %v204_v5 }
 0x196   :  { %v146_v55 = vround.rtne.f32 %v71_v53  ;;  %v147_v56 = vround.rtne.f32 %v72_v54 }
 0x198   :  { %v128_v57 = vclamps-f32 %v146_v55, 127.0  ;;  %v129_v58 = vclamps-f32 %v147_v56, 127.0 }
 0x19e   :  { %v164_v51 = vpop.eup %163 }
 0x19f   :  { %144 = vpush %v164_v51 }
 0x1a0   :  { %148 = vpush %v96_v52 }
 0x1d0   :  { %s145_s4 = spop %144 }
 0x1d1   :  { %v79_v59 = vstv %s145_s4  ;;  %s149_s5 = spop %148 }
 0x1d2   :  { %v80_v60 = vmul.f32 %v128_v57, %v79_v59  ;;  %v81_v61 = vmul.f32 %v129_v58, %v79_v59  ;;  %s98_s6 = smax.f32 %s169_s23, %s149_s5 }
 0x1d3   :  { %v99_v62 = vstv %s98_s6 }
 0x1d4   :  { %v82_v63 = vadd.f32 %v80_v60, %v46_v40  ;;  %v83_v0 = vadd.f32 %v81_v61, %v47_v41  ;;  %165 = vrcp.f32 %v99_v62 }
 0x1de   :  { %v166_v1 = vpop.eup %165 }
 0x1df   :  { %150 = vpush %v166_v1 }
 0x210   :  { %s151_s7 = spop %150 }
 0x211   :  { %s102_s8 = smul.f32 127.0, %s151_s7 }
 0x213   :  { %v103_v2 = vstv %s102_s8 }
 0x214   :  { %167 = vrcp.f32 %v103_v2  ;;  %v107_v4 = vmul.f32 %v103_v2, %v211_v10  ;;  %v108_v5 = vmul.f32 %v103_v2, %v216_v11 }
 0x216   :  { %v154_v6 = vround.rtne.f32 %v107_v4  ;;  %v155_v7 = vround.rtne.f32 %v108_v5 }
 0x218   :  { %v130_v8 = vclamps-f32 %v154_v6, 127.0  ;;  %v131_v9 = vclamps-f32 %v155_v7, 127.0 }
 0x21e   :  { %v168_v3 = vpop.eup %167 }
 0x21f   :  { %152 = vpush %v168_v3 }
 0x250   :  { %s153_s9 = spop %152 }
 0x251   :  { %v115_v12 = vstv %s153_s9 }
 0x252   :  { %v116_v13 = vmul.f32 %v130_v8, %v115_v12  ;;  %v117_v14 = vmul.f32 %v131_v9, %v115_v12 }
 0x254   :  { %v118_v15 = vadd.f32 %v116_v13, %v82_v63  ;;  %v119_v16 = vadd.f32 %v117_v14, %v83_v0 }
 0x256   :  { %120 = vst [vmem:[%s236_s3] sm:$0xff] %v118_v15  ;;  %121 = vst [vmem:[%s236_s3 + $0x8] sm:$0xff] %v119_v16 }

</bundles_post_ra>
